<compile_context>
chip_gen: v5e
topology: v5e:2x2
jax: 0.10.0
libtpu: 0.0.40
codegen_flags: <defaults>
</compile_context>

<pallas_src>
import jax
import jax.numpy as jnp
from jax import lax
from jax.experimental import pallas as pl
from jax.experimental.pallas import tpu as pltpu


def _cast_layernorm_kernel(x_ref, w_ref, b_ref, o_ref, *, eps, inv_h):
    # CastToFloat: promote non-fp32 input to float32 for the wrapped module.
    x = x_ref[...].astype(jnp.float32)                      # (rows, H) f32
    # Two-pass statistics (matches torch.nn.LayerNorm biased variance).
    mean = jnp.sum(x, axis=-1, keepdims=True) * inv_h
    xc = x - mean
    var = jnp.sum(xc * xc, axis=-1, keepdims=True) * inv_h
    inv = lax.rsqrt(var + eps)                               # EUP, free slot
    w = w_ref[...]                                           # hoisted, read once
    b = b_ref[...]
    y = xc * inv * w + b                                     # f32 LayerNorm
    # CastToFloat: cast result back to the original input dtype.
    o_ref[...] = y.astype(o_ref.dtype)


def _round_up(n, m):
    return ((n + m - 1) // m) * m


def _vmem_budgets():
    """Generation-aware (per-step budget, vmem_limit_bytes)."""
    try:
        cap = pltpu.get_tpu_info().vmem_capacity_bytes
    except Exception:  # conservative fallback if query unavailable
        cap = 64 * 1024 * 1024
    if cap >= 128 * 1024 * 1024:        # v5e / v6e
        return 24 * 1024 * 1024, 64 * 1024 * 1024
    else:                               # v7x (64 MiB) or smaller
        return 16 * 1024 * 1024, 48 * 1024 * 1024


def _choose_row_tile(R, H, itemsize, budget):
    """Pick a bandwidth-friendly row tile.

    Per-row live VMEM:
      2 (double buffer) * 2 (in + out) * H * itemsize    block buffers
      + ~3 * H * 4                                        live f32 temporaries
    Always a multiple of 16 (full bf16 vreg sublane packing).  Aim for >=2
    grid steps (v7x dual TensorCore) when there are enough rows, otherwise
    a single maximal step.
    """
    per_row = 2 * 2 * H * itemsize + 3 * H * 4
    cap = max(16, (budget // per_row) // 16 * 16)
    cap = min(cap, 2048)
    if R <= 16:
        return 16
    # Try to produce at least 2 grid steps; never throttle below 16 rows.
    rt = min(cap, _round_up(pl.cdiv(R, 2), 16))
    return max(16, rt)


def cast_to_float_layernorm(x, weight, bias, *, eps=1e-5, row_tile=None):
    """CastToFloat(nn.LayerNorm(H)) forward.  x: [..., H], any float dtype.

    Note: H that is a multiple of 128 keeps the output store path lane-dense;
    other H still produces correct results (full-dim block) at reduced store
    bandwidth.
    """
    orig_shape = x.shape
    H = orig_shape[-1]
    x2 = x.reshape(-1, H)                                    # (R, H)
    R = x2.shape[0]
    itemsize = x2.dtype.itemsize

    budget, vmem_limit = _vmem_budgets()
    if row_tile is None:
        row_tile = _choose_row_tile(R, H, itemsize, budget)

    w2 = weight.reshape(1, H).astype(jnp.float32)
    b2 = bias.reshape(1, H).astype(jnp.float32)

    grid = (pl.cdiv(R, row_tile),)                           # ragged last block OK

    cost = pl.CostEstimate(
        flops=int(10 * R * H),
        transcendentals=int(R),
        bytes_accessed=int(2 * R * H * itemsize + 2 * H * 4),
    )

    out = pl.pallas_call(
        lambda xr, wr, br, orr: _cast_layernorm_kernel(
            xr, wr, br, orr, eps=eps, inv_h=1.0 / H),
        out_shape=jax.ShapeDtypeStruct((R, H), x.dtype),
        grid=grid,
        in_specs=[
            pl.BlockSpec((row_tile, H), lambda i: (i, 0)),
            pl.BlockSpec((1, H), lambda i: (0, 0)),          # constant block: no re-DMA
            pl.BlockSpec((1, H), lambda i: (0, 0)),
        ],
        out_specs=pl.BlockSpec((row_tile, H), lambda i: (i, 0)),
        compiler_params=pltpu.CompilerParams(
            dimension_semantics=("parallel",),
            vmem_limit_bytes=vmem_limit,
        ),
        cost_estimate=cost,
    )(x2, w2, b2)

    return out.reshape(orig_shape)


def _reference(x, weight, bias, eps=1e-5):
    xf = x.astype(jnp.float32)
    mean = jnp.mean(xf, axis=-1, keepdims=True)
    var = jnp.mean((xf - mean) ** 2, axis=-1, keepdims=True)
    y = (xf - mean) / jnp.sqrt(var + eps) * weight + bias
    return y.astype(x.dtype)


if __name__ == "__main__":
    # TODO(synk): torch.is_autocast_enabled() is host-side control flow with no
    # Pallas equivalent; this kernel implements the autocast/non-fp32 branch
    # (compute in fp32, cast back), which is also correct for fp32 inputs.
    B, S, H = 2, 8, 128
    key = jax.random.PRNGKey(0)
    kx, kw, kb = jax.random.split(key, 3)

    # Input in bf16 (the dtype that triggers CastToFloat's fp32 path).
    x = jax.random.normal(kx, (B, S, H), dtype=jnp.float32).astype(jnp.bfloat16)
    # nn.LayerNorm(H) parameters: weight/bias = [H].
    weight = 1.0 + 0.1 * jax.random.normal(kw, (H,), dtype=jnp.float32)
    bias = 0.1 * jax.random.normal(kb, (H,), dtype=jnp.float32)

    out = cast_to_float_layernorm(x, weight, bias)
    out = jax.block_until_ready(out)

    ref = _reference(x, weight, bias)
    assert out.dtype == x.dtype
    assert out.shape == x.shape
    err = jnp.max(jnp.abs(out.astype(jnp.float32) - ref.astype(jnp.float32)))
    assert float(err) < 1e-1, f"max abs err {err}"

    # Exercise the ragged last-block path (R=21 not divisible by the 16-row tile).
    x_odd = jax.random.normal(kx, (3, 7, H), dtype=jnp.float32).astype(jnp.bfloat16)
    out_odd = jax.block_until_ready(cast_to_float_layernorm(x_odd, weight, bias))
    ref_odd = _reference(x_odd, weight, bias)
    err_odd = jnp.max(jnp.abs(out_odd.astype(jnp.float32) - ref_odd.astype(jnp.float32)))
    assert float(err_odd) < 1e-1, f"max abs err (odd) {err_odd}"

    print("KERNEL_OK")
</pallas_src>

<mosaic_0001>
module attributes {stable_mosaic.version = 11 : i64} {
  func.func @_lambda_(%arg0: i32, %arg1: memref<16x128xbf16, #tpu.memory_space<vmem>>, %arg2: memref<1x128xf32, #tpu.memory_space<vmem>>, %arg3: memref<1x128xf32, #tpu.memory_space<vmem>>, %arg4: memref<16x128xbf16, #tpu.memory_space<vmem>>) attributes {dimension_semantics = [#tpu.dimension_semantics<parallel>], iteration_bounds = array<i64: 1>, scalar_prefetch = 0 : i64, scratch_operands = 0 : i64, tpu.core_type = #tpu.core_type<tc>, window_params = [{transform_indices = @transform_0, window_bounds = array<i64: 16, 128>}, {pipeline_mode = #tpu.pipeline_mode<synchronous>, transform_indices = @transform_1, window_bounds = array<i64: 1, 128>}, {pipeline_mode = #tpu.pipeline_mode<synchronous>, transform_indices = @transform_2, window_bounds = array<i64: 1, 128>}, {transform_indices = @transform_3, window_bounds = array<i64: 16, 128>}]} {
    %c0 = arith.constant 0 : index
    %c0_0 = arith.constant 0 : index
    %0 = vector.load %arg1[%c0, %c0_0] : memref<16x128xbf16, #tpu.memory_space<vmem>>, vector<16x128xbf16>
    %1 = arith.extf %0 : vector<16x128xbf16> to vector<16x128xf32>
    %cst = arith.constant dense<0.000000e+00> : vector<16xf32>
    %2 = vector.multi_reduction <add>, %1, %cst [1] : vector<16x128xf32> to vector<16xf32>
    %3 = vector.shape_cast %2 : vector<16xf32> to vector<16x1xf32>
    %cst_1 = arith.constant 7.812500e-03 : f32
    %4 = vector.broadcast %cst_1 : f32 to vector<16x1xf32>
    %5 = arith.mulf %3, %4 : vector<16x1xf32>
    %6 = vector.broadcast %5 : vector<16x1xf32> to vector<16x128xf32>
    %7 = arith.subf %1, %6 : vector<16x128xf32>
    %8 = arith.mulf %7, %7 : vector<16x128xf32>
    %cst_2 = arith.constant dense<0.000000e+00> : vector<16xf32>
    %9 = vector.multi_reduction <add>, %8, %cst_2 [1] : vector<16x128xf32> to vector<16xf32>
    %10 = vector.shape_cast %9 : vector<16xf32> to vector<16x1xf32>
    %cst_3 = arith.constant 7.812500e-03 : f32
    %11 = vector.broadcast %cst_3 : f32 to vector<16x1xf32>
    %12 = arith.mulf %10, %11 : vector<16x1xf32>
    %cst_4 = arith.constant 9.99999974E-6 : f32
    %13 = vector.broadcast %cst_4 : f32 to vector<16x1xf32>
    %14 = arith.addf %12, %13 : vector<16x1xf32>
    %15 = math.rsqrt %14 : vector<16x1xf32>
    %c0_5 = arith.constant 0 : index
    %c0_6 = arith.constant 0 : index
    %16 = vector.load %arg2[%c0_5, %c0_6] : memref<1x128xf32, #tpu.memory_space<vmem>>, vector<1x128xf32>
    %c0_7 = arith.constant 0 : index
    %c0_8 = arith.constant 0 : index
    %17 = vector.load %arg3[%c0_7, %c0_8] : memref<1x128xf32, #tpu.memory_space<vmem>>, vector<1x128xf32>
    %18 = vector.broadcast %15 : vector<16x1xf32> to vector<16x128xf32>
    %19 = arith.mulf %7, %18 : vector<16x128xf32>
    %20 = vector.broadcast %16 : vector<1x128xf32> to vector<16x128xf32>
    %21 = arith.mulf %19, %20 : vector<16x128xf32>
    %22 = vector.broadcast %17 : vector<1x128xf32> to vector<16x128xf32>
    %23 = arith.addf %21, %22 : vector<16x128xf32>
    %24 = arith.truncf %23 : vector<16x128xf32> to vector<16x128xbf16>
    %c0_9 = arith.constant 0 : index
    %c0_10 = arith.constant 0 : index
    %25 = vector.load %arg4[%c0_9, %c0_10] : memref<16x128xbf16, #tpu.memory_space<vmem>>, vector<16x128xbf16>
    tpu.vector_store %arg4[%c0_9, %c0_10], %24 {strides = array<i32>} : memref<16x128xbf16, #tpu.memory_space<vmem>>, vector<16x128xbf16>,
    return
  }
  func.func @transform_0(%arg0: i32) -> (i32, i32) {
    %c0_i32 = arith.constant 0 : i32
    %c0_i32_0 = arith.constant 0 : i32
    return %arg0, %c0_i32 : i32, i32
  }
  func.func @transform_1(%arg0: i32) -> (i32, i32) {
    %c0_i32 = arith.constant 0 : i32
    %c0_i32_0 = arith.constant 0 : i32
    %c0_i32_1 = arith.constant 0 : i32
    return %c0_i32, %c0_i32_0 : i32, i32
  }
  func.func @transform_2(%arg0: i32) -> (i32, i32) {
    %c0_i32 = arith.constant 0 : i32
    %c0_i32_0 = arith.constant 0 : i32
    %c0_i32_1 = arith.constant 0 : i32
    return %c0_i32, %c0_i32_0 : i32, i32
  }
  func.func @transform_3(%arg0: i32) -> (i32, i32) {
    %c0_i32 = arith.constant 0 : i32
    %c0_i32_0 = arith.constant 0 : i32
    return %arg0, %c0_i32 : i32, i32
  }
}

</mosaic_0001>

<bundles_post_ra>
// kernel: tpu_custom_call.1
= control target key start
LH: loop header
LB: loop body
LE: loop exit
PB: predicated region body
PF: predicated region fallthrough
CT: control target
= control target key end

     0   :  { %8 = vsyncpa [#allocation3], 0  ;;  %s266_s0 = inlined_call_operand.hbm [shape: bf16[16,128], index: 0, kind: input, shape index: {}]   ;;  %s267_s1 = inlined_call_operand.hbm [shape: f32[1,128], index: 1, kind: input, shape index: {}]   ;;  %s268_s2 = inlined_call_operand.vmem [shape: f32[1,128], index: 2, kind: input, shape index: {}]   ;;  %s269_s3 = inlined_call_operand.hbm [shape: bf16[16,128], index: 3, kind: output, shape index: {}]  }
   0x1   :  { %9 = vsyncpa [#allocation6], 0 }
   0x2   :  { %10 = vsyncpa [#allocation4], 0  ;;  %s15_s14 = sshll.u32 %s266_s0, 4  ;;  %s223_s15 = smov [#allocation2]   ;;  %s16_s14 = int_to_ptr.hbm [resolvable:$true] %s15_s14 }
   0x3   :  { %s17_s16 = sshll.u32 %s223_s15, 4  ;;  %s29_s19 = sshll.u32 %s267_s1, 4  ;;  %s18_s16 = int_to_ptr.vmem [resolvable:$true] %s17_s16  ;;  %s30_s19 = int_to_ptr.hbm [resolvable:$true] %s29_s19 }
   0x4   :  { %s224_s20 = smov 64   ;;  %s225_s21 = smov 4  }
   0x5   :  { %23 = dma.hbm_to_vmem [thread:$0]  %s16_s14, 128, %s18_s16, [#allocation3], %s224_s20, %s224_s20, %s225_s21  }
   0x6   :  { %s226_s22 = smov [#allocation5]  }
   0x7   :  { %s31_s23 = sshll.u32 %s226_s22, 4  ;;  %s32_s23 = int_to_ptr.vmem [resolvable:$true] %s31_s23 }
   0x8   :  { %34 = dma.hbm_to_vmem [thread:$0]  %s30_s19, 16, %s32_s23, [#allocation6]  }
   0x9   :  { %217 = dma.done.wait [#allocation3], 128  }
   0xa   :  { %218 = vsyncadd [#allocation3], 4294967168 }
   0xb   :  { %219 = dma.done.wait [#allocation6], 16  }
   0xc   :  { %220 = vsyncadd [#allocation6], 4294967280  ;;  %v126_v0 = vld [vmem:[#allocation2] sm:$0xff]   ;;  %v139_v30 = vld [vmem:[#allocation5] ss:$0 sm:$0xff]  ;;  %s227_s24 = smov [#allocation7]  }
   0xd   :  { %v127_v1 = vunpack.c.l.bf16 %v126_v0  ;;  %v128_v2 = vunpack.c.h.bf16 %v126_v0  ;;  %v140_v35 = vld [vmem:[%s268_s2] ss:$0 sm:$0xff]  ;;  %s109_s25 = sshll.u32 %s227_s24, 4  ;;  %s111_s28 = sshll.u32 %s269_s3, 4  ;;  %s110_s25 = int_to_ptr.vmem [resolvable:$true] %s109_s25  ;;  %s112_s28 = int_to_ptr.hbm [resolvable:$true] %s111_s28 }
   0xf   :  { %49 = vadd.xlane.f32.xlu0 %v127_v1 }
  0x17   :  { %51 = vadd.xlane.f32.xlu0 %v128_v2 }
  0x82   :  { %v50_v3 = vpop.xlane.xlu0 %49 }
  0x83   :  { %v53_v4 = vmul.f32 0.0078125, %v50_v3 }
  0x85   :  { %v55_v5 = vsub.f32 %v127_v1, %v53_v4 }
  0x87   :  { %v57_v6 = vmul.f32 %v55_v5, %v55_v5 }
  0x89   :  { %59 = vadd.xlane.f32.xlu1 %v57_v6 }
  0x8a   :  { %v52_v7 = vpop.xlane.xlu0 %51 }
  0x8b   :  { %v54_v8 = vmul.f32 0.0078125, %v52_v7 }
  0x8d   :  { %v56_v9 = vsub.f32 %v128_v2, %v54_v8 }
  0x8f   :  { %v58_v10 = vmul.f32 %v56_v9, %v56_v9 }
  0x91   :  { %61 = vadd.xlane.f32.xlu1 %v58_v10 }
  0xfc   :  { %v60_v11 = vpop.xlane.xlu1 %59 }
  0xfd   :  { %v63_v12 = vmul.f32 0.0078125, %v60_v11 }
  0xff   :  { %v65_v13 = vadd.f32 1e-05, %v63_v12 }
 0x101   :  { %141 = vrsqrt.f32 %v65_v13  ;;  %vm73_vm1 = vweird.f32 %v65_v13 }
 0x104   :  { %v62_v14 = vpop.xlane.xlu1 %61 }
 0x105   :  { %v64_v15 = vmul.f32 0.0078125, %v62_v14 }
 0x107   :  { %v142_v16 = vpop.eup %141  ;;  %v66_v17 = vadd.f32 1e-05, %v64_v15 }
 0x108   :  { %v68_v18 = vmul.f32 %v142_v16, %v65_v13  ;;  %vm74_vm0 = vweird.f32 %v142_v16 }
 0x109   :  { %143 = vrsqrt.f32 %v66_v17  ;;  %vm75_vm2 = vmor %vm73_vm1, %vm74_vm0  ;;  %vm83_vm4 = vweird.f32 %v66_v17 }
 0x10a   :  { %v69_v19 = vmul.f32 %v142_v16, %v68_v18 }
 0x10c   :  { %v70_v20 = vmul.f32 0.5, %v69_v19 }
 0x10e   :  { %v71_v21 = vsub.f32 1.5, %v70_v20 }
 0x10f   :  { %v144_v22 = vpop.eup %143 }
 0x110   :  { %v72_v23 = vmul.f32 %v142_v16, %v71_v21  ;;  %v78_v24 = vmul.f32 %v144_v22, %v66_v17  ;;  %vm84_vm3 = vweird.f32 %v144_v22 }
 0x111   :  { %vm85_vm5 = vmor %vm83_vm4, %vm84_vm3 }
 0x112   :  { %v79_v25 = vmul.f32 %v144_v22, %v78_v24  ;;  %v76_v26 = vsel %vm75_vm2, %v142_v16, %v72_v23 }
 0x113   :  { %v89_v29 = vmul.f32 %v76_v26, %v55_v5 }
 0x114   :  { %v80_v27 = vmul.f32 0.5, %v79_v25 }
 0x115   :  { %v94_v34 = vmul.f32 %v139_v30, %v89_v29 }
 0x116   :  { %v81_v28 = vsub.f32 1.5, %v80_v27 }
 0x117   :  { %v99_v37 = vadd.f32 %v140_v35, %v94_v34 }
 0x118   :  { %v82_v31 = vmul.f32 %v144_v22, %v81_v28 }
 0x11a   :  { %v86_v32 = vsel %vm85_vm5, %v144_v22, %v82_v31 }
 0x11b   :  { %v90_v33 = vmul.f32 %v86_v32, %v56_v9 }
 0x11d   :  { %v95_v36 = vmul.f32 %v139_v30, %v90_v33 }
 0x11f   :  { %v100_v38 = vadd.f32 %v140_v35, %v95_v36 }
 0x121   :  { %v132_v39 = vpack.c.bf16 %v100_v38, %v99_v37 }
 0x123   :  { %133 = vst [vmem:[#allocation7] sm:$0xff] %v132_v39  }
 0x124   :  { %117 = dma.vmem_to_hbm [thread:$0]  %s110_s25, 128, %s112_s28, [#allocation4], %s224_s20, %s224_s20, %s225_s21  }
 0x125   :  { %221 = dma.done.wait [#allocation4], 128  }
 0x126   :  { %222 = vsyncadd [#allocation4], 4294967168 }
 0x127   :  { %122 = vsyncpa [#allocation3], 1 }
 0x128   :  { %123 = vsyncpa [#allocation6], 1 }
 0x129   :  { %124 = vsyncpa [#allocation4], 1 }

</bundles_post_ra>
